<compile_context>
chip_gen: v7x
topology: tpu7x:2x2x1
jax: 0.10.0
libtpu: 0.0.40
codegen_flags: <defaults>
</compile_context>

<pallas_src>
import jax
import jax.numpy as jnp
from jax.experimental import pallas as pl
from jax.experimental.pallas import tpu as pltpu


def _feature_str_kernel(x_ref, thr_ref, o_ref):
    # x_ref:   (TB, TN)  tile of the flattened (B, N*D) feature
    # thr_ref: (1,  TN)  precomputed sigmoid(field), broadcast over rows
    # o_ref:   (TB, TN)
    x = x_ref[...]
    thr = thr_ref[...]
    # Two-sided soft shrink == sign(x) * relu(|x| - thr) for thr >= 0.
    o_ref[...] = jnp.maximum(x - thr, 0) + jnp.minimum(x + thr, 0)


def feature_str_forward(feature, field, *, target_tile_bytes=2 << 20):
    """feature: (B, N, D), field: (N, D) -> (B, N, D)"""
    B, N, D = feature.shape
    assert field.shape == (N, D)
    nd = N * D
    itemsize = jnp.dtype(feature.dtype).itemsize

    # Hoist the transcendental out of the kernel (O(N*D) vs O(B*N*D) stream).
    thr = jax.nn.sigmoid(field.astype(jnp.float32)).astype(feature.dtype)

    # Lane-dense 2D views.
    x2d = feature.reshape(B, nd)
    thr2d = thr.reshape(1, nd)

    # ---- tile sizing -------------------------------------------------------
    # Lane-axis tile: whole flattened row if modest, otherwise a 128-aligned
    # chunk so that >= 8 batch rows still fit in the target tile size.
    if nd * 8 * itemsize <= target_tile_bytes:
        tn = nd
    else:
        tn = max(128, (target_tile_bytes // (8 * itemsize)) // 128 * 128)
        tn = min(tn, nd)

    # Batch-axis tile: ~target_tile_bytes per tile (double-buffered in+out of
    # a 2 MiB tile is ~8 MiB VMEM, safe on v5e/v6e/v7x default scoped limits).
    row_bytes = tn * itemsize
    tb = max(1, target_tile_bytes // max(row_bytes, 1))
    tb = min(tb, B)
    if tb < B:
        # Sublane constraint: block dim must be a multiple of 8 (or == full B).
        tb = max(8, (tb // 8) * 8)
        tb = min(tb, B)
    elif B >= 16 and pl.cdiv(nd, tn) == 1:
        # Ensure >= 2 grid blocks so both v7x TensorCores get work.
        tb = min(B, (((B + 1) // 2) + 7) // 8 * 8)

    grid = (pl.cdiv(B, tb), pl.cdiv(nd, tn))

    out2d = pl.pallas_call(
        _feature_str_kernel,
        out_shape=jax.ShapeDtypeStruct((B, nd), feature.dtype),
        grid_spec=pltpu.PrefetchScalarGridSpec(
            num_scalar_prefetch=0,
            grid=grid,
            in_specs=[
                pl.BlockSpec((tb, tn), lambda b, j: (b, j)),
                pl.BlockSpec((1, tn), lambda b, j: (0, j)),
            ],
            out_specs=pl.BlockSpec((tb, tn), lambda b, j: (b, j)),
        ),
        compiler_params=pltpu.CompilerParams(
            dimension_semantics=("parallel", "parallel")),
        cost_estimate=pl.CostEstimate(
            flops=5 * B * nd,
            transcendentals=0,
            bytes_accessed=(2 * B * nd + nd) * itemsize),
    )(x2d, thr2d)

    return out2d.reshape(B, N, D)


class FeatureSTRLayer:
    """JAX/Pallas equivalent of the PyTorch FeatureSTRLayer."""

    def __init__(self, featureNumb, featureDim, init=-15.0, field=None):
        self.featureNumb = featureNumb
        self.featureDim = featureDim
        if field is None:
            # Same deterministic init as PyTorch: init * ones(featureNumb, featureDim)
            self.field = init * jnp.ones((featureNumb, featureDim), jnp.float32)
        else:
            self.field = field

    def __call__(self, feature):
        # PyTorch broadcasts field[None, :, :] against feature; same here.
        return feature_str_forward(feature, self.field)


def _reference(feature, field):
    s = jax.nn.sigmoid(field.astype(jnp.float32))[None, :, :]
    x = feature.astype(jnp.float32)
    return jnp.sign(x) * jnp.maximum(jnp.abs(x) - s, 0.0)


if __name__ == "__main__":
    key = jax.random.PRNGKey(0)

    # (B, featureNumb, featureDim) configs:
    #  - single full-block tile
    #  - multi-block batch grid with a partial last block
    #  - non-(8,128)-aligned featureNumb/featureDim (flattened lane axis)
    configs = [(2, 8, 128), (20, 8, 128), (6, 5, 32)]

    ok = True
    for (B, N, D) in configs:
        key, sub = jax.random.split(key)
        feature = jax.random.normal(sub, (B, N, D), jnp.float32)

        # Non-degenerate init so the threshold actually does something.
        layer = FeatureSTRLayer(N, D, init=-1.0)

        out = layer(feature)
        out = jax.block_until_ready(out)

        ref = _reference(feature, layer.field)
        ok &= out.shape == (B, N, D)
        ok &= bool(jnp.allclose(out, ref, atol=1e-5, rtol=1e-5))

    assert ok
    print("KERNEL_OK")
</pallas_src>

<mosaic_0001>
module attributes {stable_mosaic.version = 11 : i64} {
  func.func @_feature_str_kernel(%arg0: i32, %arg1: i32, %arg2: memref<2x1024xf32, #tpu.memory_space<vmem>>, %arg3: memref<1x1024xf32, #tpu.memory_space<vmem>>, %arg4: memref<2x1024xf32, #tpu.memory_space<vmem>>) attributes {dimension_semantics = [#tpu.dimension_semantics<parallel>, #tpu.dimension_semantics<parallel>], iteration_bounds = array<i64: 1, 1>, scalar_prefetch = 0 : i64, scratch_operands = 0 : i64, tpu.core_type = #tpu.core_type<tc>, window_params = [{transform_indices = @transform_0, window_bounds = array<i64: 2, 1024>}, {transform_indices = @transform_1, window_bounds = array<i64: 1, 1024>}, {transform_indices = @transform_2, window_bounds = array<i64: 2, 1024>}]} {
    %c0 = arith.constant 0 : index
    %c0_0 = arith.constant 0 : index
    %0 = vector.load %arg2[%c0, %c0_0] : memref<2x1024xf32, #tpu.memory_space<vmem>>, vector<2x1024xf32>
    %c0_1 = arith.constant 0 : index
    %c0_2 = arith.constant 0 : index
    %1 = vector.load %arg3[%c0_1, %c0_2] : memref<1x1024xf32, #tpu.memory_space<vmem>>, vector<1x1024xf32>
    %2 = vector.broadcast %1 : vector<1x1024xf32> to vector<2x1024xf32>
    %3 = arith.subf %0, %2 : vector<2x1024xf32>
    %cst = arith.constant 0.000000e+00 : f32
    %4 = vector.broadcast %cst : f32 to vector<2x1024xf32>
    %5 = arith.maximumf %3, %4 : vector<2x1024xf32>
    %6 = vector.broadcast %1 : vector<1x1024xf32> to vector<2x1024xf32>
    %7 = arith.addf %0, %6 : vector<2x1024xf32>
    %cst_3 = arith.constant 0.000000e+00 : f32
    %8 = vector.broadcast %cst_3 : f32 to vector<2x1024xf32>
    %9 = arith.minimumf %7, %8 : vector<2x1024xf32>
    %10 = arith.addf %5, %9 : vector<2x1024xf32>
    %c0_4 = arith.constant 0 : index
    %c0_5 = arith.constant 0 : index
    %11 = vector.load %arg4[%c0_4, %c0_5] : memref<2x1024xf32, #tpu.memory_space<vmem>>, vector<2x1024xf32>
    tpu.vector_store %arg4[%c0_4, %c0_5], %10 {strides = array<i32>} : memref<2x1024xf32, #tpu.memory_space<vmem>>, vector<2x1024xf32>,
    return
  }
  func.func @transform_0(%arg0: i32, %arg1: i32) -> (i32, i32) {
    %c0_i32 = arith.constant 0 : i32
    return %arg0, %arg1 : i32, i32
  }
  func.func @transform_1(%arg0: i32, %arg1: i32) -> (i32, i32) {
    %c0_i32 = arith.constant 0 : i32
    %c0_i32_0 = arith.constant 0 : i32
    return %c0_i32, %arg1 : i32, i32
  }
  func.func @transform_2(%arg0: i32, %arg1: i32) -> (i32, i32) {
    %c0_i32 = arith.constant 0 : i32
    return %arg0, %arg1 : i32, i32
  }
}

</mosaic_0001>

<bundles_post_ra>
// kernel: tpu_custom_call.1
= control target key start
LH: loop header
LB: loop body
LE: loop exit
PB: predicated region body
PF: predicated region fallthrough
CT: control target
= control target key end

     0   :  { %7 = vsyncpa [#allocation3], 0  ;;  %s267_s0 = inlined_call_operand.hbm [shape: f32[2,1024], index: 0, kind: input, shape index: {}]   ;;  %s268_s1 = inlined_call_operand.hbm [shape: f32[1,1024], index: 1, kind: input, shape index: {}]   ;;  %s269_s2 = inlined_call_operand.hbm [shape: f32[2,1024], index: 2, kind: output, shape index: {}]  }
   0x1   :  { %8 = vsyncpa [#allocation6], 0 }
   0x2   :  { %9 = vsyncpa [#allocation4], 0  ;;  %s212_s9 = smov [#allocation2]   ;;  %s213_s11 = smov [#allocation5]  }
   0x3   :  { %s16_s10 = sshll.u32 %s212_s9, 4  ;;  %s26_s12 = sshll.u32 %s213_s11, 4  ;;  %s17_s10 = int_to_ptr.vmem [resolvable:$true] %s16_s10  ;;  %s27_s12 = int_to_ptr.vmem [resolvable:$true] %s26_s12 }
   0x4   :  { %s140_s15 = scalar_lea.hbm %s267_s0, 256 }
   0x5   :  { %p141_p0 = scmp.ne.s32.totalorder %s267_s0, %s140_s15  ;;  %p144_p1 = scmp.lt.u32.totalorder %s140_s15, %s267_s0 }
   0x7   :  { %p146_p2 = pnand %p144_p1, %p141_p0 }
   0x9   :  { %149 = shalt.err (!%p146_p2)
}
   0xa   :  { %s150_s20 = scalar_lea.vmem %s17_s10, 256  ;;  %p155_p4 = scmp.lt.s32.totalorder %s17_s10, %s17_s10 }
   0xb   :  { %p151_p3 = scmp.ne.s32.totalorder %s17_s10, %s150_s20  ;;  %p156_p5 = scmp.lt.s32.totalorder %s150_s20, %s150_s20 }
   0xd   :  { %p157_p6 = por %p156_p5, %p155_p4 }
   0xf   :  { %p158_p7 = pnand %p157_p6, %p151_p3 }
  0x11   :  { %161 = shalt.err (!%p158_p7)
}
  0x12   :  { %19 = dma.hbm_to_vmem [thread:$0]  %s267_s0, 256, %s17_s10, [#allocation3]  }
  0x13   :  { %s162_s25 = scalar_lea.hbm %s268_s1, 128 }
  0x14   :  { %p163_p8 = scmp.ne.s32.totalorder %s268_s1, %s162_s25  ;;  %p166_p9 = scmp.lt.u32.totalorder %s162_s25, %s268_s1 }
  0x16   :  { %p168_p10 = pnand %p166_p9, %p163_p8 }
  0x18   :  { %171 = shalt.err (!%p168_p10)
}
  0x19   :  { %s172_s30 = scalar_lea.vmem %s27_s12, 128  ;;  %p177_p12 = scmp.lt.s32.totalorder %s27_s12, %s27_s12 }
  0x1a   :  { %p173_p11 = scmp.ne.s32.totalorder %s27_s12, %s172_s30  ;;  %p178_p13 = scmp.lt.s32.totalorder %s172_s30, %s172_s30 }
  0x1c   :  { %p179_p0 = por %p178_p13, %p177_p12 }
  0x1e   :  { %p180_p1 = pnand %p179_p0, %p173_p11 }
  0x20   :  { %183 = shalt.err (!%p180_p1)
}
  0x21   :  { %29 = dma.hbm_to_vmem [thread:$0]  %s268_s1, 128, %s27_s12, [#allocation6]  }
  0x22   :  { %206 = dma.done.wait [#allocation3], 256  }
  0x23   :  { %207 = vsyncadd [#allocation3], 4294967040 }
  0x24   :  { %208 = dma.done.wait [#allocation6], 128  }
  0x25   :  { %209 = vsyncadd [#allocation6], 4294967168  ;;  %v40_v0 = vlaneseq  ;;  %v214_v1 = vmov 1983009808   ;;  %v38_v13 = vld [vmem:[#allocation5] sm:$0xff]  ;;  %v36_v29 = vld [vmem:[#allocation2] sm:$0xff] }
  0x26   :  { %v75_v2 = vunpack.c.l.s4 %v214_v1  ;;  %v37_v33 = vld [vmem:[#allocation2 + $0x8] sm:$0xff]  ;;  %s215_s1 = smov [#allocation7]  }
  0x27   :  { %v41_v3 = vshrl.u32 %v40_v0, 7  ;;  %s126_s4 = sshll.u32 %s215_s1, 4  ;;  %s127_s4 = int_to_ptr.vmem [resolvable:$true] %s126_s4 }
  0x28   :  { %v76_v4 = vunpack.c.0.s8 %v75_v2  ;;  %s184_s5 = scalar_lea.vmem %s127_s4, 256  ;;  %p189_p3 = scmp.lt.s32.totalorder %s127_s4, %s127_s4 }
  0x29   :  { %v42_v5 = vsub.s32 0, %v41_v3  ;;  %v46_v6 = vsub.s32 1, %v41_v3  ;;  %v50_v7 = vsub.s32 2, %v41_v3  ;;  %v54_v8 = vsub.s32 3, %v41_v3  ;;  %p185_p2 = scmp.ne.s32.totalorder %s127_s4, %s184_s5  ;;  %p190_p4 = scmp.lt.s32.totalorder %s184_s5, %s184_s5 }
  0x2a   :  { %v58_v9 = vsub.s32 4, %v41_v3  ;;  %v62_v10 = vsub.s32 5, %v41_v3  ;;  %v66_v11 = vsub.s32 6, %v41_v3  ;;  %v70_v12 = vsub.s32 7, %v41_v3 }
  0x2b   :  { %v79_v14 = vsub.s32 %v76_v4, %v41_v3  ;;  %v43_v15 = vrot.slane %v38_v13, %v42_v5  ;;  %v47_v16 = vrot.slane %v38_v13, %v46_v6  ;;  %v51_v17 = vrot.slane %v38_v13, %v50_v7  ;;  %p191_p5 = por %p190_p4, %p189_p3 }
  0x2c   :  { %v55_v18 = vrot.slane %v38_v13, %v54_v8  ;;  %v59_v19 = vrot.slane %v38_v13, %v58_v9  ;;  %v63_v20 = vrot.slane %v38_v13, %v62_v10  ;;  %v67_v21 = vrot.slane %v38_v13, %v66_v11 }
  0x2d   :  { %v71_v22 = vrot.slane %v38_v13, %v70_v12  ;;  %v72_v23 = vcombine.low %v43_v15, %v47_v16  ;;  %p192_p6 = pnand %p191_p5, %p185_p2 }
  0x2e   :  { %v73_v24 = vcombine.low %v51_v17, %v55_v18  ;;  %v89_v25 = vcombine.low %v59_v19, %v63_v20 }
  0x2f   :  { %v90_v26 = vcombine.low %v67_v21, %v71_v22  ;;  %v80_v27 = vrot.slane %v72_v23, %v79_v14 }
  0x30   :  { %v87_v28 = vrot.slane %v73_v24, %v79_v14  ;;  %v97_v30 = vrot.slane %v89_v25, %v79_v14 }
  0x31   :  { %v104_v31 = vrot.slane %v90_v26, %v79_v14 }
  0x32   :  { %v88_v32 = vcombine.low %v80_v27, %v87_v28 }
  0x33   :  { %v105_v34 = vcombine.low %v97_v30, %v104_v31 }
  0x34   :  { %v108_v35 = vsub.f32 %v36_v29, %v88_v32  ;;  %v112_v36 = vadd.f32 %v88_v32, %v36_v29 }
  0x35   :  { %v109_v37 = vsub.f32 %v37_v33, %v105_v34  ;;  %v113_v38 = vadd.f32 %v105_v34, %v37_v33 }
  0x36   :  { %v110_v39 = vmax.f32 %v108_v35, 0.0  ;;  %v114_v40 = vmin.f32 %v112_v36, 0.0 }
  0x37   :  { %v111_v41 = vmax.f32 %v109_v37, 0.0  ;;  %v115_v42 = vmin.f32 %v113_v38, 0.0 }
  0x38   :  { %v116_v43 = vadd.f32 %v114_v40, %v110_v39 }
  0x39   :  { %v117_v44 = vadd.f32 %v115_v42, %v111_v41 }
  0x3a   :  { %118 = vst [vmem:[#allocation7] sm:$0xff] %v116_v43 }
  0x3b   :  { %119 = vst [vmem:[#allocation7 + $0x8] sm:$0xff] %v117_v44 }
  0x3c   :  { %195 = shalt.err (!%p192_p6)
}
  0x3d   :  { %s196_s8 = scalar_lea.hbm %s269_s2, 256 }
  0x3e   :  { %p197_p7 = scmp.ne.s32.totalorder %s269_s2, %s196_s8  ;;  %p200_p8 = scmp.lt.u32.totalorder %s196_s8, %s269_s2 }
  0x40   :  { %p202_p9 = pnand %p200_p8, %p197_p7 }
  0x42   :  { %205 = shalt.err (!%p202_p9)
}
  0x43   :  { %129 = dma.vmem_to_hbm [thread:$0]  %s127_s4, 256, %s269_s2, [#allocation4]  }
  0x44   :  { %210 = dma.done.wait [#allocation4], 256  }
  0x45   :  { %211 = vsyncadd [#allocation4], 4294967040 }
  0x46   :  { %133 = vsyncpa [#allocation3], 1 }
  0x47   :  { %134 = vsyncpa [#allocation6], 1 }
  0x48   :  { %135 = vsyncpa [#allocation4], 1 }

</bundles_post_ra>
